<compile_context>
chip_gen: v7x
topology: tpu7x:2x2x1
jax: 0.10.0
libtpu: 0.0.40
codegen_flags: <defaults>
</compile_context>

<pallas_src>
import numpy as np
import jax
import jax.numpy as jnp
from jax.experimental import pallas as pl
from jax.experimental.pallas import tpu as pltpu


# ----------------------------- Pallas kernel --------------------------------
def cnet_kernel(x_ref, w1_ref, b1_ref, w2_ref, b2_ref, w3_ref, b3_ref, o_ref):
    # x_ref : [TILE_B, d_in] f32          w1 : [d_in, Wp] bf16   b1 : [1, Wp] f32
    # w2    : [Wp, Wp] bf16               b2 : [1, Wp] f32
    # w3    : [1, Wp] f32 (row)           b3 : SMEM scalar, shape (1,)
    # o_ref : [1, TILE_B] f32  (lane-dense Q row)
    x = x_ref[...]
    # Layer 1: bf16 MXU matmul, f32 accumulation, f32 bias + ReLU on the VPU.
    h1 = jnp.dot(x.astype(jnp.bfloat16), w1_ref[...],
                 preferred_element_type=jnp.float32) + b1_ref[...]
    h1 = jnp.maximum(h1, 0.0)
    # Layer 2: cast activations to bf16 only at the MXU boundary.
    h2 = jnp.dot(h1.astype(jnp.bfloat16), w2_ref[...],
                 preferred_element_type=jnp.float32) + b2_ref[...]
    h2 = jnp.maximum(h2, 0.0)
    # Width-1 head: f32 VPU multiply + XLU lane reduce (no 1-column MXU matmul).
    q = jnp.sum(h2 * w3_ref[...], axis=-1) + b3_ref[0]          # [TILE_B]
    o_ref[...] = q[None, :].astype(o_ref.dtype)


# ------------------------------ helpers --------------------------------------
def _round_up(x, m):
    return ((x + m - 1) // m) * m


def _c_net_xla(x, prepared):
    """Small-batch fallback: same math as the kernel, plain XLA."""
    w1, b1, w2, b2, w3, b3 = prepared
    h1 = jax.nn.relu(jnp.dot(x.astype(jnp.bfloat16), w1,
                             preferred_element_type=jnp.float32) + b1)
    h2 = jax.nn.relu(jnp.dot(h1.astype(jnp.bfloat16), w2,
                             preferred_element_type=jnp.float32) + b2)
    return jnp.sum(h2 * w3, axis=-1, keepdims=True) + b3.reshape(1, 1)


# ------------------------------ wrapper --------------------------------------
def c_net_forward(a, s, prepared, *, tile_b=1024, xla_fallback_batch=128):
    """Pallas-backed C_net forward. a: [B, action_n], s: [B, state_n] -> [B, 1]."""
    w1, b1, w2, b2, w3, b3 = prepared
    B, action_n = a.shape
    state_n = s.shape[1]
    d_in = action_n + state_n
    wp = w2.shape[1]

    # One cheap wrapper-side concat; a single K=d_in matmul inside the kernel.
    x = jnp.concatenate([a, s], axis=-1)                         # [B, d_in] f32

    # At tiny batches the whole net is <1 MFLOP: plain XLA beats a custom call.
    if B <= xla_fallback_batch:
        return _c_net_xla(x, prepared)

    # Tile selection: single block for modest batches; otherwise split so the
    # grid has >= 2 steps (feeds both v7x TensorCores), 128-lane aligned so the
    # (1, tb) output blocks stay unmasked, capped at tile_b.
    if B <= 256:
        tb = B
    else:
        tb = min(tile_b, _round_up(pl.cdiv(B, 2), 128))
    grid = (pl.cdiv(B, tb),)

    def resident(shape):  # weights/biases: same block every grid step
        return pl.BlockSpec(shape, lambda i: (0, 0))

    flops = 2 * B * (d_in * wp + wp * wp + wp)
    bytes_accessed = (x.size * 4
                      + w1.size * w1.dtype.itemsize
                      + w2.size * w2.dtype.itemsize
                      + (b1.size + b2.size + w3.size + b3.size) * 4
                      + B * 4)
    cost = pl.CostEstimate(flops=int(flops), transcendentals=0,
                           bytes_accessed=int(bytes_accessed))

    q_row = pl.pallas_call(
        cnet_kernel,
        out_shape=jax.ShapeDtypeStruct((1, B), jnp.float32),
        grid=grid,
        in_specs=[
            pl.BlockSpec((tb, d_in), lambda i: (i, 0)),           # x
            resident((d_in, wp)),                                 # W1 (bf16)
            resident((1, wp)),                                    # b1
            resident((wp, wp)),                                   # W2 (bf16)
            resident((1, wp)),                                    # b2
            resident((1, wp)),                                    # W3 row (f32)
            pl.BlockSpec(memory_space=pltpu.MemorySpace.SMEM),    # b3 scalar
        ],
        out_specs=pl.BlockSpec((1, tb), lambda i: (0, i)),
        compiler_params=pltpu.CompilerParams(
            dimension_semantics=("parallel",)),
        cost_estimate=cost,
    )(x, w1, b1, w2, b2, w3, b3)

    # (1, B) -> (B, 1): pure reshape of the same linear layout (bitcast-cheap).
    return q_row.reshape(B, 1)


# ----------------------- deterministic parameter init -----------------------
def orthogonal_init(key, shape, gain):
    """Replicates nn.init.orthogonal_(W, gain) for a [out, in] matrix,
    returned transposed as [in, out] for x @ W usage."""
    out_f, in_f = shape
    rows, cols = (out_f, in_f) if out_f >= in_f else (in_f, out_f)
    m = jax.random.normal(key, (rows, cols), dtype=jnp.float32)
    q, r = jnp.linalg.qr(m)
    q = q * jnp.sign(jnp.diag(r))[None, :]
    if out_f < in_f:
        q = q.T  # now [out_f, in_f]
    w_pt = gain * q             # PyTorch layout: [out, in]
    return jnp.asarray(w_pt.T)  # our layout:     [in, out]


def init_c_net_params(key, action_n, state_n, net_width):
    gain = float(np.sqrt(2.0))
    k1, k2, k3 = jax.random.split(key, 3)
    d_in = state_n + action_n
    w1 = orthogonal_init(k1, (net_width, d_in), gain)       # [d_in, W]
    b1 = jnp.zeros((1, net_width), jnp.float32)
    w2 = orthogonal_init(k2, (net_width, net_width), gain)  # [W, W]
    b2 = jnp.zeros((1, net_width), jnp.float32)
    w3 = orthogonal_init(k3, (1, net_width), gain)          # [W, 1]
    b3 = jnp.zeros((1, 1), jnp.float32)
    return (w1, b1, w2, b2, w3, b3)


def prepare_params(params, lane=128):
    """Zero-pad the hidden width to a multiple of 128 lanes (mathematical no-op)
    and cast the big matmul weights W1/W2 to bf16 (single-pass MXU, half the
    VMEM / load traffic). Biases, the head row W3 and b3 stay f32."""
    w1, b1, w2, b2, w3, b3 = params
    W = w1.shape[1]
    wp = _round_up(W, lane)
    pad = wp - W

    def pad_last(x):
        return jnp.pad(x, [(0, 0)] * (x.ndim - 1) + [(0, pad)])

    w1p = pad_last(w1).astype(jnp.bfloat16)                     # [d_in, Wp] bf16
    b1p = pad_last(b1)                                          # [1, Wp] f32
    w2p = jnp.pad(w2, ((0, pad), (0, pad))).astype(jnp.bfloat16)  # [Wp, Wp] bf16
    b2p = pad_last(b2)                                          # [1, Wp] f32
    w3r = pad_last(w3.reshape(1, W))                            # [1, Wp] f32 row
    b3s = b3.reshape(1)                                         # (1,) for SMEM
    return (w1p, b1p, w2p, b2p, w3r, b3s)


# ------------------------- pure-JAX references --------------------------------
def c_net_ref_matched(a, s, params):
    """Reference using the same bf16-at-the-MXU math as the kernel."""
    w1, b1, w2, b2, w3, b3 = params
    x = jnp.concatenate([a, s], axis=-1)
    h1 = jax.nn.relu(jnp.dot(x.astype(jnp.bfloat16), w1.astype(jnp.bfloat16),
                             preferred_element_type=jnp.float32) + b1)
    h2 = jax.nn.relu(jnp.dot(h1.astype(jnp.bfloat16), w2.astype(jnp.bfloat16),
                             preferred_element_type=jnp.float32) + b2)
    return jnp.sum(h2 * w3.reshape(1, -1), axis=-1, keepdims=True) + b3


def c_net_ref_f32(a, s, params):
    """Full-f32 gold reference (looser tolerance vs. the bf16 kernel)."""
    w1, b1, w2, b2, w3, b3 = params
    hi = jax.lax.Precision.HIGHEST
    x = jnp.concatenate([a, s], axis=-1)
    h1 = jax.nn.relu(jnp.dot(x, w1, precision=hi) + b1)
    h2 = jax.nn.relu(jnp.dot(h1, w2, precision=hi) + b2)
    return jnp.dot(h2, w3, precision=hi) + b3


if __name__ == "__main__":
    # Small shapes consistent with the module's forward.
    batch, action_n, state_n, net_width = 8, 4, 12, 32

    key = jax.random.PRNGKey(0)
    k_a, k_s, k_p = jax.random.split(key, 3)
    a = jax.random.normal(k_a, (batch, action_n), dtype=jnp.float32)
    s = jax.random.normal(k_s, (batch, state_n), dtype=jnp.float32)
    params = init_c_net_params(k_p, action_n, state_n, net_width)
    prepared = prepare_params(params)

    # Small batch, force the Pallas path (fallback disabled).
    q = jax.block_until_ready(c_net_forward(a, s, prepared, xla_fallback_batch=0))
    assert q.shape == (batch, 1)
    np.testing.assert_allclose(np.asarray(q), np.asarray(c_net_ref_matched(a, s, params)),
                               rtol=1e-2, atol=1e-2)
    np.testing.assert_allclose(np.asarray(q), np.asarray(c_net_ref_f32(a, s, params)),
                               rtol=5e-2, atol=1e-1)

    # Larger ragged batch: exercises the tiled / two-step (megacore) Pallas path.
    B2 = 1040
    k_a2, k_s2 = jax.random.split(jax.random.PRNGKey(1), 2)
    a2 = jax.random.normal(k_a2, (B2, action_n), dtype=jnp.float32)
    s2 = jax.random.normal(k_s2, (B2, state_n), dtype=jnp.float32)
    q2 = jax.block_until_ready(c_net_forward(a2, s2, prepared))
    assert q2.shape == (B2, 1)
    np.testing.assert_allclose(np.asarray(q2),
                               np.asarray(c_net_ref_matched(a2, s2, params)),
                               rtol=1e-2, atol=1e-2)

    # Small-batch XLA fallback path (default threshold) agrees with the kernel.
    q_fb = jax.block_until_ready(c_net_forward(a, s, prepared))
    np.testing.assert_allclose(np.asarray(q_fb), np.asarray(q), rtol=1e-2, atol=1e-2)

    print("KERNEL_OK")
</pallas_src>

<mosaic_0001>
module attributes {stable_mosaic.version = 11 : i64} {
  func.func @cnet_kernel(%arg0: i32, %arg1: memref<8x16xf32, #tpu.memory_space<vmem>>, %arg2: memref<16x128xbf16, #tpu.memory_space<vmem>>, %arg3: memref<1x128xf32, #tpu.memory_space<vmem>>, %arg4: memref<128x128xbf16, #tpu.memory_space<vmem>>, %arg5: memref<1x128xf32, #tpu.memory_space<vmem>>, %arg6: memref<1x128xf32, #tpu.memory_space<vmem>>, %arg7: memref<1xf32, #tpu.memory_space<smem>>, %arg8: memref<1x8xf32, #tpu.memory_space<vmem>>) attributes {dimension_semantics = [#tpu.dimension_semantics<parallel>], iteration_bounds = array<i64: 1>, scalar_prefetch = 0 : i64, scratch_operands = 0 : i64, tpu.core_type = #tpu.core_type<tc>, window_params = [{transform_indices = @transform_0, window_bounds = array<i64: 8, 16>}, {pipeline_mode = #tpu.pipeline_mode<synchronous>, transform_indices = @transform_1, window_bounds = array<i64: 16, 128>}, {pipeline_mode = #tpu.pipeline_mode<synchronous>, transform_indices = @transform_2, window_bounds = array<i64: 1, 128>}, {pipeline_mode = #tpu.pipeline_mode<synchronous>, transform_indices = @transform_3, window_bounds = array<i64: 128, 128>}, {pipeline_mode = #tpu.pipeline_mode<synchronous>, transform_indices = @transform_4, window_bounds = array<i64: 1, 128>}, {pipeline_mode = #tpu.pipeline_mode<synchronous>, transform_indices = @transform_5, window_bounds = array<i64: 1, 128>}, {transform_indices = @transform_6, window_bounds = array<i64: 1>}, {transform_indices = @transform_7, window_bounds = array<i64: 1, 8>}]} {
    %c0 = arith.constant 0 : index
    %c0_0 = arith.constant 0 : index
    %0 = vector.load %arg1[%c0, %c0_0] : memref<8x16xf32, #tpu.memory_space<vmem>>, vector<8x16xf32>
    %1 = arith.truncf %0 : vector<8x16xf32> to vector<8x16xbf16>
    %c0_1 = arith.constant 0 : index
    %c0_2 = arith.constant 0 : index
    %2 = vector.load %arg2[%c0_1, %c0_2] : memref<16x128xbf16, #tpu.memory_space<vmem>>, vector<16x128xbf16>
    %cst = arith.constant dense<0.000000e+00> : vector<8x128xf32>
    %3 = tpu.matmul %1, %2, %cst {dimension_numbers = #tpu.dot_dimension_numbers<[1], [0], [0], [1], [0, 0, 1, 1], [], []>} : vector<8x16xbf16>, vector<16x128xbf16>, vector<8x128xf32> -> vector<8x128xf32>
    %c0_3 = arith.constant 0 : index
    %c0_4 = arith.constant 0 : index
    %4 = vector.load %arg3[%c0_3, %c0_4] : memref<1x128xf32, #tpu.memory_space<vmem>>, vector<1x128xf32>
    %5 = vector.broadcast %4 : vector<1x128xf32> to vector<8x128xf32>
    %6 = arith.addf %3, %5 : vector<8x128xf32>
    %cst_5 = arith.constant 0.000000e+00 : f32
    %7 = vector.broadcast %cst_5 : f32 to vector<8x128xf32>
    %8 = arith.maximumf %6, %7 : vector<8x128xf32>
    %9 = arith.truncf %8 : vector<8x128xf32> to vector<8x128xbf16>
    %c0_6 = arith.constant 0 : index
    %c0_7 = arith.constant 0 : index
    %10 = vector.load %arg4[%c0_6, %c0_7] : memref<128x128xbf16, #tpu.memory_space<vmem>>, vector<128x128xbf16>
    %cst_8 = arith.constant dense<0.000000e+00> : vector<8x128xf32>
    %11 = tpu.matmul %9, %10, %cst_8 {dimension_numbers = #tpu.dot_dimension_numbers<[1], [0], [0], [1], [0, 0, 1, 1], [], []>} : vector<8x128xbf16>, vector<128x128xbf16>, vector<8x128xf32> -> vector<8x128xf32>
    %c0_9 = arith.constant 0 : index
    %c0_10 = arith.constant 0 : index
    %12 = vector.load %arg5[%c0_9, %c0_10] : memref<1x128xf32, #tpu.memory_space<vmem>>, vector<1x128xf32>
    %13 = vector.broadcast %12 : vector<1x128xf32> to vector<8x128xf32>
    %14 = arith.addf %11, %13 : vector<8x128xf32>
    %cst_11 = arith.constant 0.000000e+00 : f32
    %15 = vector.broadcast %cst_11 : f32 to vector<8x128xf32>
    %16 = arith.maximumf %14, %15 : vector<8x128xf32>
    %c0_12 = arith.constant 0 : index
    %c0_13 = arith.constant 0 : index
    %17 = vector.load %arg6[%c0_12, %c0_13] : memref<1x128xf32, #tpu.memory_space<vmem>>, vector<1x128xf32>
    %18 = vector.broadcast %17 : vector<1x128xf32> to vector<8x128xf32>
    %19 = arith.mulf %16, %18 : vector<8x128xf32>
    %cst_14 = arith.constant dense<0.000000e+00> : vector<8xf32>
    %20 = vector.multi_reduction <add>, %19, %cst_14 [1] : vector<8x128xf32> to vector<8xf32>
    %c0_15 = arith.constant 0 : index
    %21 = memref.load %arg7[%c0_15] : memref<1xf32, #tpu.memory_space<smem>>
    %22 = vector.broadcast %21 : f32 to vector<8xf32>
    %23 = arith.addf %20, %22 : vector<8xf32>
    %24 = vector.shape_cast %23 : vector<8xf32> to vector<1x8xf32>
    %c0_16 = arith.constant 0 : index
    %c0_17 = arith.constant 0 : index
    %25 = vector.load %arg8[%c0_16, %c0_17] : memref<1x8xf32, #tpu.memory_space<vmem>>, vector<1x8xf32>
    tpu.vector_store %arg8[%c0_16, %c0_17], %24 {strides = array<i32>} : memref<1x8xf32, #tpu.memory_space<vmem>>, vector<1x8xf32>,
    return
  }
  func.func @transform_0(%arg0: i32) -> (i32, i32) {
    %c0_i32 = arith.constant 0 : i32
    %c0_i32_0 = arith.constant 0 : i32
    return %arg0, %c0_i32 : i32, i32
  }
  func.func @transform_1(%arg0: i32) -> (i32, i32) {
    %c0_i32 = arith.constant 0 : i32
    %c0_i32_0 = arith.constant 0 : i32
    %c0_i32_1 = arith.constant 0 : i32
    return %c0_i32, %c0_i32_0 : i32, i32
  }
  func.func @transform_2(%arg0: i32) -> (i32, i32) {
    %c0_i32 = arith.constant 0 : i32
    %c0_i32_0 = arith.constant 0 : i32
    %c0_i32_1 = arith.constant 0 : i32
    return %c0_i32, %c0_i32_0 : i32, i32
  }
  func.func @transform_3(%arg0: i32) -> (i32, i32) {
    %c0_i32 = arith.constant 0 : i32
    %c0_i32_0 = arith.constant 0 : i32
    %c0_i32_1 = arith.constant 0 : i32
    return %c0_i32, %c0_i32_0 : i32, i32
  }
  func.func @transform_4(%arg0: i32) -> (i32, i32) {
    %c0_i32 = arith.constant 0 : i32
    %c0_i32_0 = arith.constant 0 : i32
    %c0_i32_1 = arith.constant 0 : i32
    return %c0_i32, %c0_i32_0 : i32, i32
  }
  func.func @transform_5(%arg0: i32) -> (i32, i32) {
    %c0_i32 = arith.constant 0 : i32
    %c0_i32_0 = arith.constant 0 : i32
    %c0_i32_1 = arith.constant 0 : i32
    return %c0_i32, %c0_i32_0 : i32, i32
  }
  func.func @transform_6(%arg0: i32) -> i32 {
    %c0_i32 = arith.constant 0 : i32
    %c0_i32_0 = arith.constant 0 : i32
    return %c0_i32 : i32
  }
  func.func @transform_7(%arg0: i32) -> (i32, i32) {
    %c0_i32 = arith.constant 0 : i32
    %c0_i32_0 = arith.constant 0 : i32
    return %c0_i32, %arg0 : i32, i32
  }
}

</mosaic_0001>

<bundles_post_ra>
// kernel: tpu_custom_call.1
= control target key start
LH: loop header
LB: loop body
LE: loop exit
PB: predicated region body
PF: predicated region fallthrough
CT: control target
= control target key end

     0   :  { %13 = vsyncpa [#allocation4], 0  ;;  %s557_s0 = inlined_call_operand.hbm [shape: f32[8,16], index: 0, kind: input, shape index: {}]   ;;  %s558_s1 = inlined_call_operand.hbm [shape: bf16[16,128], index: 1, kind: input, shape index: {}]   ;;  %s559_s2 = inlined_call_operand.vmem [shape: f32[1,128], index: 2, kind: input, shape index: {}]   ;;  %s560_s3 = inlined_call_operand.hbm [shape: bf16[128,128], index: 3, kind: input, shape index: {}]   ;;  %s561_s4 = inlined_call_operand.vmem [shape: f32[1,128], index: 4, kind: input, shape index: {}]   ;;  %s562_s5 = inlined_call_operand.vmem [shape: f32[1,128], index: 5, kind: input, shape index: {}]   ;;  %s563_s6 = inlined_call_operand.<no memory space> [shape: f32[1], index: 6, kind: input, shape index: {}]   ;;  %s564_s7 = inlined_call_operand.hbm [shape: f32[1,8], index: 7, kind: output, shape index: {}]  }
   0x1   :  { %14 = vsyncpa [#allocation7], 0 }
   0x2   :  { %15 = vsyncpa [#allocation5], 0  ;;  %s443_s24 = smov [#allocation6]   ;;  %s349_s28 = scalar_lea.hbm %s558_s1, 128 }
   0x3   :  { %s31_s25 = sshll.u32 %s443_s24, 4  ;;  %p350_p0 = scmp.ne.s32.totalorder %s558_s1, %s349_s28  ;;  %s32_s25 = int_to_ptr.vmem [resolvable:$true] %s31_s25 }
   0x4   :  { %p353_p1 = scmp.lt.u32.totalorder %s349_s28, %s558_s1 }
   0x6   :  { %p355_p2 = pnand %p353_p1, %p350_p0 }
   0x8   :  { %358 = shalt.err (!%p355_p2)
}
   0x9   :  { %s359_s10 = scalar_lea.vmem %s32_s25, 128  ;;  %p364_p4 = scmp.lt.s32.totalorder %s32_s25, %s32_s25 }
   0xa   :  { %p360_p3 = scmp.ne.s32.totalorder %s32_s25, %s359_s10  ;;  %p365_p5 = scmp.lt.s32.totalorder %s359_s10, %s359_s10 }
   0xc   :  { %p366_p6 = por %p365_p5, %p364_p4 }
   0xe   :  { %p367_p7 = pnand %p366_p6, %p360_p3 }
  0x10   :  { %370 = shalt.err (!%p367_p7)
}
  0x11   :  { %s444_s11 = smov 64   ;;  %s445_s12 = smov 4  }
  0x12   :  { %37 = dma.hbm_to_vmem [thread:$0]  %s558_s1, 128, %s32_s25, [#allocation7], %s444_s11, %s444_s11, %s445_s12  }
  0x13   :  { %s446_s15 = smov [#allocation3]   ;;  %s447_s17 = smov [#allocation8]  }
  0x14   :  { %s22_s16 = sshll.u32 %s446_s15, 4  ;;  %s45_s18 = sshll.u32 %s447_s17, 4  ;;  %s23_s16 = int_to_ptr.vmem [resolvable:$true] %s22_s16  ;;  %s46_s18 = int_to_ptr.vmem [resolvable:$true] %s45_s18 }
  0x15   :  { %s371_s21 = scalar_lea.hbm %s557_s0, 128 }
  0x16   :  { %p372_p8 = scmp.ne.s32.totalorder %s557_s0, %s371_s21  ;;  %p375_p9 = scmp.lt.u32.totalorder %s371_s21, %s557_s0 }
  0x18   :  { %p377_p10 = pnand %p375_p9, %p372_p8 }
  0x1a   :  { %380 = shalt.err (!%p377_p10)
}
  0x1b   :  { %s381_s1 = scalar_lea.vmem %s23_s16, 128  ;;  %p386_p12 = scmp.lt.s32.totalorder %s23_s16, %s23_s16 }
  0x1c   :  { %p382_p11 = scmp.ne.s32.totalorder %s23_s16, %s381_s1  ;;  %p387_p13 = scmp.lt.s32.totalorder %s381_s1, %s381_s1 }
  0x1e   :  { %p388_p0 = por %p387_p13, %p386_p12 }
  0x20   :  { %p389_p1 = pnand %p388_p0, %p382_p11 }
  0x22   :  { %392 = shalt.err (!%p389_p1)
}
  0x23   :  { %25 = dma.hbm_to_vmem [thread:$0]  %s557_s0, 128, %s23_s16, [#allocation4]  }
  0x24   :  { %s393_s30 = scalar_lea.hbm %s560_s3, 1024 }
  0x25   :  { %p394_p2 = scmp.ne.s32.totalorder %s560_s3, %s393_s30  ;;  %p397_p3 = scmp.lt.u32.totalorder %s393_s30, %s560_s3 }
  0x27   :  { %p399_p4 = pnand %p397_p3, %p394_p2 }
  0x29   :  { %402 = shalt.err (!%p399_p4)
}
  0x2a   :  { %s403_s14 = scalar_lea.vmem %s46_s18, 1024  ;;  %p408_p6 = scmp.lt.s32.totalorder %s46_s18, %s46_s18 }
  0x2b   :  { %p404_p5 = scmp.ne.s32.totalorder %s46_s18, %s403_s14  ;;  %p409_p7 = scmp.lt.s32.totalorder %s403_s14, %s403_s14 }
  0x2d   :  { %p410_p8 = por %p409_p7, %p408_p6 }
  0x2f   :  { %p411_p9 = pnand %p410_p8, %p404_p5 }
  0x31   :  { %414 = shalt.err (!%p411_p9)
}
  0x32   :  { %51 = dma.hbm_to_vmem [thread:$0]  %s560_s3, 1024, %s46_s18, [#allocation7], %s444_s11, %s444_s11, %s445_s12  }
  0x33   :  { %437 = dma.done.wait [#allocation4], 128  }
  0x34   :  { %438 = vsyncadd [#allocation4], 4294967168 }
  0x35   :  { %439 = dma.done.wait [#allocation7], 1152  }
  0x36   :  { %440 = vsyncadd [#allocation7], 4294966144  ;;  %v448_v0 = vmov 0.0   ;;  %vm449_vm0 = vmmov 0   ;;  %v340_v1 = vld [vmem:[#allocation6] sm:$0xff]   ;;  %v68_v2 = vld [vmem:[#allocation3] sm:$0xff]  ;;  %v257_v29 = vlaneseq  ;;  %v254_v32 = vstv %s563_s6 }
  0x37   :  { %306 = vmatprep.subr.bf16.mxu0 %v448_v0  ;;  %308 = vmatprep.mubr.msk.bf16.mxu0 %vm449_vm0, %v448_v0  ;;  %v69_v3 = vpack.c.bf16 %v68_v2, %v68_v2  ;;  %vm85_vm1 = vcmask 130048   ;;  %v341_v4 = vld [vmem:[#allocation8] sm:$0xff]   ;;  %v342_v5 = vld [vmem:[#allocation8 + $0x8] sm:$0xff]   ;;  %v343_v6 = vld [vmem:[#allocation8 + $0x10] sm:$0xff]   ;;  %vm264_vm2 = vcmask 57344  }
  0x38   :  { %312 = vmatprep.subr.bf16.mxu1 %v448_v0  ;;  %328 = vmatprep.mubr.msk.bf16.mxu1 %vm449_vm0, %v448_v0  ;;  %v344_v7 = vld [vmem:[#allocation8 + $0x18] sm:$0xff]   ;;  %v345_v8 = vld [vmem:[#allocation8 + $0x20] sm:$0xff]   ;;  %v346_v9 = vld [vmem:[#allocation8 + $0x28] sm:$0xff]   ;;  %v258_v30 = vand.u32 127, %v257_v29  ;;  %v260_v31 = vshrl.u32 %v257_v29, 7 }
  0x39   :  { %307 = vmatpush3.bf16.msra.mxu0 %v340_v1  ;;  %313 = vmatpush3.bf16.msra.mxu1 %v341_v4  ;;  %v347_v10 = vld [vmem:[#allocation8 + $0x30] sm:$0xff]   ;;  %v348_v11 = vld [vmem:[#allocation8 + $0x38] sm:$0xff]  }
  0x3a   :  { %314 = vmatprep.subr.bf16.mxu1 %v448_v0  ;;  %v282_v12 = vld [vmem:[%s559_s2] ss:$0 sm:$0xff]  ;;  %v261_v33 = vsub.s32 %v258_v30, %v260_v31 }
  0x3b   :  { %v285_v20 = vld [vmem:[%s561_s4] ss:$0 sm:$0xff]  ;;  %s450_s4 = smov [#allocation9]  }
  0x3c   :  { %309 = vmatmul.mubr.msk.bf16.vlgmr.msra.gmra.mrb[0].mxu0 %vm85_vm1, %v69_v3  ;;  %v294_v25 = vld [vmem:[%s562_s5] ss:$0 sm:$0xff]  ;;  %s272_s20 = sshll.u32 %s450_s4, 4  ;;  %s273_s20 = int_to_ptr.vmem [resolvable:$true] %s272_s20 }
  0x3d   :  { %315 = vmatpush3.bf16.msra.mxu1 %v342_v5  ;;  %s415_s5 = scalar_lea.vmem %s273_s20, 16  ;;  %s419_s21 = scalar_lea.vmem %s273_s20, 32 }
  0x3e   :  { %316 = vmatprep.subr.bf16.mxu1 %v448_v0  ;;  %p416_p10 = scmp.ne.s32.totalorder %s273_s20, %s415_s5  ;;  %p420_p11 = scmp.lt.s32.totalorder %s273_s20, %s273_s20 }
  0x3f   :  { %p421_p12 = scmp.lt.s32.totalorder %s419_s21, %s415_s5 }
  0x41   :  { %317 = vmatpush3.bf16.msra.mxu1 %v343_v6  ;;  %p422_p13 = por %p421_p12, %p420_p11 }
  0x42   :  { %318 = vmatprep.subr.bf16.mxu1 %v448_v0 }
  0x43   :  { %p423_p0 = pnand %p422_p13, %p416_p10 }
  0x45   :  { %319 = vmatpush3.bf16.msra.mxu1 %v344_v7 }
  0x46   :  { %320 = vmatprep.subr.bf16.mxu1 %v448_v0 }
  0x49   :  { %321 = vmatpush3.bf16.msra.mxu1 %v345_v8 }
  0x4a   :  { %322 = vmatprep.subr.bf16.mxu1 %v448_v0 }
  0x4d   :  { %323 = vmatpush3.bf16.msra.mxu1 %v346_v9 }
  0x4e   :  { %324 = vmatprep.subr.bf16.mxu1 %v448_v0 }
  0x51   :  { %325 = vmatpush3.bf16.msra.mxu1 %v347_v10 }
  0x52   :  { %326 = vmatprep.subr.bf16.mxu1 %v448_v0 }
  0x55   :  { %327 = vmatpush3.bf16.msra.mxu1 %v348_v11 }
 0x10f   :  { %v123_v13 = vpop.f32.mrb[0].mxu0 }
 0x110   :  { %v124_v14 = vadd.f32 %v282_v12, %v123_v13  ;;  %v310_v15 = vpop.f32.mrb[1].mxu0 }
 0x111   :  { %v126_v16 = vpop.f32.mrb[2].mxu0 }
 0x112   :  { %v129_v17 = vmax.f32 %v124_v14, 0.0  ;;  %v311_v18 = vpop.f32.mrb[3].mxu0 }
 0x114   :  { %v130_v19 = vpack.c.bf16 %v129_v17, %v129_v17 }
 0x116   :  { %329 = vmatmul.mubr.bf16.vlgmr.msra.gmra.mrb[0].mxu1 %v130_v19 }
 0x1e9   :  { %v236_v21 = vpop.f32.mrb[0].mxu1 }
 0x1ea   :  { %v237_v22 = vadd.f32 %v285_v20, %v236_v21  ;;  %v330_v23 = vpop.f32.mrb[1].mxu1 }
 0x1eb   :  { %v239_v24 = vpop.f32.mrb[2].mxu1 }
 0x1ec   :  { %v242_v26 = vmax.f32 %v237_v22, 0.0  ;;  %v331_v27 = vpop.f32.mrb[3].mxu1 }
 0x1ee   :  { %v250_v28 = vmul.f32 %v294_v25, %v242_v26 }
 0x1f0   :  { %251 = vadd.xlane.f32.xlu0 %v250_v28 }
 0x27d   :  { %v252_v34 = vpop.xlane.xlu0 %251 }
 0x27e   :  { %v255_v35 = vadd.f32 %v254_v32, %v252_v34 }
 0x280   :  { %v262_v36 = vrot.slane %v255_v35, %v261_v33 }
 0x282   :  { %265 = vst.msk [vmem:[#allocation9] sm:$0x1] %vm264_vm2, %v262_v36 }
 0x283   :  { %426 = shalt.err (!%p423_p0)
}
 0x284   :  { %s427_s6 = scalar_lea.hbm %s564_s7, 16 }
 0x285   :  { %p428_p1 = scmp.ne.s32.totalorder %s564_s7, %s427_s6  ;;  %p431_p2 = scmp.lt.u32.totalorder %s427_s6, %s564_s7 }
 0x287   :  { %p433_p3 = pnand %p431_p2, %p428_p1 }
 0x289   :  { %436 = shalt.err (!%p433_p3)
}
 0x28a   :  { %275 = dma.vmem_to_hbm [thread:$0]  %s273_s20, 16, %s564_s7, [#allocation5]  }
 0x28b   :  { %441 = dma.done.wait [#allocation5], 16  }
 0x28c   :  { %442 = vsyncadd [#allocation5], 4294967280 }
 0x28d   :  { %279 = vsyncpa [#allocation4], 1 }
 0x28e   :  { %280 = vsyncpa [#allocation7], 1 }
 0x28f   :  { %281 = vsyncpa [#allocation5], 1 }

</bundles_post_ra>
